<compile_context>
chip_gen: v7x
topology: tpu7x:2x2x1
jax: 0.10.0
libtpu: 0.0.40
codegen_flags: <defaults>
</compile_context>

<pallas_src>
import functools

import jax
import jax.numpy as jnp
from jax.experimental import pallas as pl
from jax.experimental.pallas import tpu as pltpu


def gvae_forward_kernel(
    adj_ref, feat_ref, eps_ref,           # per-graph inputs
    wmuvar_ref,                           # (N*E, 2N) f32: fused fc_mu|fc_var
    fslab_ref,                            # (F+6, 256) f32: wg + bias vectors
    wslab_ref,                            # (432, 225) bf16: decoder weights
    out_ref,                              # (4, 128) f32 lane-aligned output
    flat_ref,                             # (1, N*E) f32 scratch
    *, k, F, N, E, d_di, d_h, rows,
):
    f32, bf16 = jnp.float32, jnp.bfloat16
    kk, kf = k * k, k * F
    r_wdz, r_wdr, r_wf1, r_wf2, r_wh = rows

    # ---- unpack f32 slab (static ref slices: cheap in-VMEM loads) ----------
    wg = fslab_ref[0:F, 0:E]                       # (F, E)
    bg = fslab_ref[F:F + 1, 0:E]                   # (1, E)
    bmuvar = fslab_ref[F + 1:F + 2, 0:2 * N]       # (1, 2N)
    bdi = fslab_ref[F + 2:F + 3, 0:d_di]           # (1, d_di)
    bf1 = fslab_ref[F + 3:F + 4, 0:d_h]            # (1, d_h)
    bf2 = fslab_ref[F + 4:F + 5, 0:d_h]            # (1, d_h)
    bhead = fslab_ref[F + 5:F + 6, 0:kk + kf]      # (1, kk+kf)

    # ---- encoder: GCN stand-in  embed = relu(adj @ feat @ Wg + bg) ---------
    h = jnp.dot(adj_ref[...], feat_ref[...], preferred_element_type=f32)
    embed = jnp.maximum(jnp.dot(h, wg, preferred_element_type=f32) + bg, 0.0)  # (N, E)

    # ---- torch.flatten(embed): N static lane-offset stores into scratch ----
    for n in range(N):
        flat_ref[0:1, n * E:(n + 1) * E] = embed[n:n + 1, :]
    flat = flat_ref[...]                                     # (1, N*E)

    # ---- fc_mu | fc_var fused: one MXU GEMV ---------------------------------
    mv = jnp.dot(flat, wmuvar_ref[...], preferred_element_type=f32) + bmuvar  # (1, 2N)
    mu = mv[:, 0:N]
    logvar = mv[:, N:2 * N]

    # ---- reparameterize: z = mu + eps * exp(0.5 * logvar) -------------------
    z = mu + eps_ref[...] * jnp.exp(0.5 * logvar)            # (1, N)

    # ---- rule_vector = bool(embed[0]) (in-place apply_ -> 0/1 floats) -------
    rule = (embed[0:1, :] != 0.0).astype(f32)                # (1, E)

    # ---- decoder: cat((z, rule)) @ W_di.T as two bf16 MXU GEMVs -------------
    res = (jnp.dot(z.astype(bf16), wslab_ref[r_wdz:r_wdz + N, 0:d_di],
                   preferred_element_type=f32)
           + jnp.dot(rule.astype(bf16), wslab_ref[r_wdr:r_wdr + E, 0:d_di],
                     preferred_element_type=f32)
           + bdi)                                            # (1, d_di)
    res = jnp.maximum(
        jnp.dot(res.astype(bf16), wslab_ref[r_wf1:r_wf1 + d_di, 0:d_h],
                preferred_element_type=f32) + bf1, 0.0)      # (1, d_h)
    res = jnp.maximum(
        jnp.dot(res.astype(bf16), wslab_ref[r_wf2:r_wf2 + d_h, 0:d_h],
                preferred_element_type=f32) + bf2, 0.0)      # (1, d_h)

    # ---- fused output heads: one matmul for [adj logits | feature logits] ---
    logits = jnp.dot(res.astype(bf16), wslab_ref[r_wh:r_wh + d_h, 0:kk + kf],
                     preferred_element_type=f32) + bhead     # (1, kk+kf)
    adj_logit = logits[:, 0:kk]
    ft_logit = logits[:, kk:kk + kf]

    # adjacency head: Linear -> Sigmoid (exact)
    adj_prob = 1.0 / (1.0 + jnp.exp(-adj_logit))
    # feature head: Linear -> Softmax over the whole flat k*F vector
    mx = jnp.max(ft_logit, axis=-1, keepdims=True)
    e = jnp.exp(ft_logit - mx)
    ft_prob = e / jnp.sum(e, axis=-1, keepdims=True)

    # ---- lane-aligned packed output: one quantity per 128-lane row ----------
    out_ref[...] = jnp.zeros_like(out_ref)
    out_ref[0:1, 0:kk] = adj_prob
    out_ref[1:2, 0:kf] = ft_prob
    out_ref[2:3, 0:N] = mu
    out_ref[3:4, 0:N] = logvar


def _linear_params(key, fan_in, fan_out):
    """PyTorch-style Linear init (deterministic): U(-1/sqrt(in), 1/sqrt(in))."""
    kw, kb = jax.random.split(key)
    bound = 1.0 / (fan_in ** 0.5)
    w = jax.random.uniform(kw, (fan_out, fan_in), jnp.float32, -bound, bound)
    b = jax.random.uniform(kb, (fan_out,), jnp.float32, -bound, bound)
    return w, b


def make_gvae_params(key, k, feature_size, embedding_size):
    max_node = k if k < 38 else 38             # mirrors the module's __init__ logic
    N, E, F = max_node, embedding_size, feature_size
    d_di = k * (N + E)
    d_h = 3 * (k // 3) * (N + E) // 3
    kk, kf = k * k, k * F
    f32, bf16 = jnp.float32, jnp.bfloat16

    keys = jax.random.split(key, 7)
    wg, bg = _linear_params(keys[0], F, E)                   # GCN stand-in
    wmu, bmu = _linear_params(keys[1], E * N, N)             # fc_mu
    wvar, bvar = _linear_params(keys[2], E * N, N)           # fc_var
    wdi, bdi = _linear_params(keys[3], E + N, d_di)          # decoder_input
    wf1, bf1 = _linear_params(keys[4], d_di, d_h)            # decoder_f1
    wf2, bf2 = _linear_params(keys[5], d_h, d_h)             # decoder_f2
    k6a, k6b = jax.random.split(keys[6])
    wadj, badj = _linear_params(k6a, d_h, kk)                # decoder_output_adj
    wft, bft = _linear_params(k6b, d_h, kf)                  # decoder_output_feature

    # fused fc_mu|fc_var as one GEMV RHS: mv = flatten(embed) @ wmuvar2d
    wmuvar2d = jnp.concatenate([wmu, wvar], axis=0).T.astype(f32)   # (N*E, 2N)
    bmuvar = jnp.concatenate([bmu, bvar])

    # ---- f32 slab: wg rows [0, F), then one bias vector per row -------------
    fw = 128 * ((max(E, 2 * N, d_di, d_h, kk + kf) + 127) // 128)
    def _row(vec):
        return jnp.zeros((1, fw), f32).at[0, :vec.shape[0]].set(vec.astype(f32))
    wg_rows = jnp.zeros((F, fw), f32).at[:, :E].set(wg.T.astype(f32))
    fslab = jnp.concatenate(
        [wg_rows, _row(bg), _row(bmuvar), _row(bdi), _row(bf1), _row(bf2),
         _row(jnp.concatenate([badj, bft]))], axis=0)                # (F+6, fw)

    # ---- bf16 slab: decoder weights stacked at 16-row-aligned offsets -------
    def _align16(r):
        return ((r + 15) // 16) * 16
    ww = d_di                                    # widest output dim (225)
    r_wdz = 0
    r_wdr = _align16(r_wdz + N)
    r_wf1 = _align16(r_wdr + E)
    r_wf2 = _align16(r_wf1 + d_di)
    r_wh = _align16(r_wf2 + d_h)
    total = _align16(r_wh + d_h)
    wslab = jnp.zeros((total, ww), bf16)
    def _put(slab, r0, w):                       # w used as matmul RHS (in, out)
        return slab.at[r0:r0 + w.shape[0], 0:w.shape[1]].set(w.astype(bf16))
    wslab = _put(wslab, r_wdz, wdi[:, :N].T)                         # z part
    wslab = _put(wslab, r_wdr, wdi[:, N:].T)                         # rule part
    wslab = _put(wslab, r_wf1, wf1.T)
    wslab = _put(wslab, r_wf2, wf2.T)
    wslab = _put(wslab, r_wh, jnp.concatenate([wadj.T, wft.T], axis=1))

    params = dict(wmuvar2d=wmuvar2d, fslab=fslab, wslab=wslab)
    dims = dict(k=k, N=N, E=E, F=F, d_di=d_di, d_h=d_h,
                wslab_rows=(r_wdz, r_wdr, r_wf1, r_wf2, r_wh))
    return params, dims


def gvae_forward_batch(X_adj, A_feat, eps, params, dims):
    """Batched Pallas GVAE.forward. X_adj:(B,N,N), A_feat:(B,N,F), eps:(B,1,N)."""
    k, N, E, F = dims["k"], dims["N"], dims["E"], dims["F"]
    d_di, d_h = dims["d_di"], dims["d_h"]
    B = X_adj.shape[0]
    kk, kf = k * k, k * F
    f32 = jnp.float32

    wmuvar, fslab, wslab = params["wmuvar2d"], params["fslab"], params["wslab"]

    kernel = functools.partial(
        gvae_forward_kernel, k=k, F=F, N=N, E=E, d_di=d_di, d_h=d_h,
        rows=dims["wslab_rows"])

    grid_spec = pltpu.PrefetchScalarGridSpec(
        num_scalar_prefetch=0,
        grid=(B,),
        in_specs=[
            pl.BlockSpec((None, N, N), lambda b: (b, 0, 0)),     # adj  (per graph)
            pl.BlockSpec((None, N, F), lambda b: (b, 0, 0)),     # feat (per graph)
            pl.BlockSpec((None, 1, N), lambda b: (b, 0, 0)),     # eps  (per graph)
            pl.BlockSpec(wmuvar.shape, lambda b: (0, 0)),        # resident weights
            pl.BlockSpec(fslab.shape, lambda b: (0, 0)),
            pl.BlockSpec(wslab.shape, lambda b: (0, 0)),
        ],
        out_specs=pl.BlockSpec((None, 4, 128), lambda b: (b, 0, 0)),
        scratch_shapes=[pltpu.VMEM((1, N * E), f32)],
    )

    packed = pl.pallas_call(
        kernel,
        out_shape=jax.ShapeDtypeStruct((B, 4, 128), f32),
        grid_spec=grid_spec,
        compiler_params=pltpu.CompilerParams(dimension_semantics=("parallel",)),
    )(X_adj.astype(f32), A_feat.astype(f32), eps.astype(f32), wmuvar, fslab, wslab)

    adj_prob = packed[:, 0, :kk].reshape(B, k, k)
    feat_prob = packed[:, 1, :kf].reshape(B, k, F)
    mu = packed[:, 2, :N]
    logvar = packed[:, 3, :N]
    return adj_prob, feat_prob, mu, logvar


def gvae_forward(X_adj, A_feat, eps, params, dims):
    """Single-graph GVAE.forward(X, A). X_adj:(N,N), A_feat:(N,F), eps:(1,N)."""
    a, f, m, v = gvae_forward_batch(X_adj[None], A_feat[None], eps[None],
                                    params, dims)
    return a[0], f[0], m[0], v[0]


def gvae_forward_ref(X_adj, A_feat, eps, params, dims):
    """Pure-JAX reference of the same forward (same bf16-quantized weights)."""
    k, N, E, F = dims["k"], dims["N"], dims["E"], dims["F"]
    d_di, d_h = dims["d_di"], dims["d_h"]
    r_wdz, r_wdr, r_wf1, r_wf2, r_wh = dims["wslab_rows"]
    kk, kf = k * k, k * F
    f32, bf16 = jnp.float32, jnp.bfloat16
    fs, ws = params["fslab"], params["wslab"]

    wg, bg = fs[0:F, 0:E], fs[F, 0:E]
    bmuvar, bdi = fs[F + 1, 0:2 * N], fs[F + 2, 0:d_di]
    b1, b2, bhead = fs[F + 3, 0:d_h], fs[F + 4, 0:d_h], fs[F + 5, 0:kk + kf]
    wdz = ws[r_wdz:r_wdz + N, 0:d_di].astype(f32)
    wdr = ws[r_wdr:r_wdr + E, 0:d_di].astype(f32)
    w1 = ws[r_wf1:r_wf1 + d_di, 0:d_h].astype(f32)
    w2 = ws[r_wf2:r_wf2 + d_h, 0:d_h].astype(f32)
    wh = ws[r_wh:r_wh + d_h, 0:kk + kf].astype(f32)

    embed = jnp.maximum(X_adj @ A_feat @ wg + bg, 0.0)
    flat = embed.reshape(1, N * E)
    mv = flat @ params["wmuvar2d"] + bmuvar
    mu, logvar = mv[:, :N], mv[:, N:]
    z = mu + eps * jnp.exp(0.5 * logvar)
    rule = (embed[0:1, :] != 0.0).astype(f32)
    res = (z.astype(bf16).astype(f32) @ wdz
           + rule.astype(bf16).astype(f32) @ wdr + bdi)
    res = jnp.maximum(res.astype(bf16).astype(f32) @ w1 + b1, 0.0)
    res = jnp.maximum(res.astype(bf16).astype(f32) @ w2 + b2, 0.0)
    logits = res.astype(bf16).astype(f32) @ wh + bhead
    adj = jax.nn.sigmoid(logits[:, :kk])
    ft = jax.nn.softmax(logits[:, kk:], axis=-1)
    return adj.reshape(k, k), ft.reshape(k, F), mu.reshape(N), logvar.reshape(N)


if __name__ == "__main__":
    k, feature_size, embedding_size = 9, 10, 16
    B = 4
    key = jax.random.PRNGKey(0)
    kp, ka, kft, ke = jax.random.split(key, 4)

    params, dims = make_gvae_params(kp, k, feature_size, embedding_size)
    N, F = dims["N"], dims["F"]

    # X: adjacency matrices (B, max_node, max_node); A: features (B, max_node, F)
    adj = (jax.random.uniform(ka, (B, N, N)) > 0.6).astype(jnp.float32)
    adj = jnp.maximum(adj, jnp.transpose(adj, (0, 2, 1)))
    feat = jax.random.normal(kft, (B, N, F), jnp.float32)
    eps = jax.random.normal(ke, (B, 1, N), jnp.float32)   # reparameterization noise

    adj_prob, feat_prob, mu, logvar = gvae_forward_batch(adj, feat, eps, params, dims)
    jax.block_until_ready((adj_prob, feat_prob, mu, logvar))

    assert adj_prob.shape == (B, k, k) and feat_prob.shape == (B, k, feature_size)
    assert mu.shape == (B, N) and logvar.shape == (B, N)

    # per-graph check against the pure-JAX reference
    for b in range(B):
        r_adj, r_ft, r_mu, r_lv = gvae_forward_ref(adj[b], feat[b], eps[b],
                                                   params, dims)
        assert jnp.allclose(adj_prob[b], r_adj, atol=2e-3, rtol=2e-3)
        assert jnp.allclose(feat_prob[b], r_ft, atol=2e-3, rtol=2e-3)
        assert jnp.allclose(mu[b], r_mu, atol=2e-3, rtol=2e-3)
        assert jnp.allclose(logvar[b], r_lv, atol=2e-3, rtol=2e-3)

    # also exercise the single-graph wrapper (matches batched result exactly)
    a1, f1, m1, v1 = gvae_forward(adj[0], feat[0], eps[0], params, dims)
    jax.block_until_ready((a1, f1, m1, v1))
    assert jnp.allclose(a1, adj_prob[0], atol=1e-5)
    assert jnp.allclose(f1, feat_prob[0], atol=1e-5)
    assert jnp.allclose(m1, mu[0], atol=1e-5)
    assert jnp.allclose(v1, logvar[0], atol=1e-5)

    print("KERNEL_OK")
</pallas_src>

<mosaic_0001>
module attributes {stable_mosaic.version = 11 : i64} {
  func.func @gvae_forward_kernel(%arg0: i32, %arg1: memref<1x9x9xf32, #tpu.memory_space<vmem>>, %arg2: memref<1x9x10xf32, #tpu.memory_space<vmem>>, %arg3: memref<1x1x9xf32, #tpu.memory_space<vmem>>, %arg4: memref<144x18xf32, #tpu.memory_space<vmem>>, %arg5: memref<16x256xf32, #tpu.memory_space<vmem>>, %arg6: memref<432x225xbf16, #tpu.memory_space<vmem>>, %arg7: memref<1x4x128xf32, #tpu.memory_space<vmem>>, %arg8: memref<1x144xf32, #tpu.memory_space<vmem>>) attributes {dimension_semantics = [#tpu.dimension_semantics<parallel>], iteration_bounds = array<i64: 4>, scalar_prefetch = 0 : i64, scratch_operands = 1 : i64, tpu.core_type = #tpu.core_type<tc>, window_params = [{transform_indices = @transform_0, window_bounds = array<i64: 1, 9, 9>}, {transform_indices = @transform_1, window_bounds = array<i64: 1, 9, 10>}, {transform_indices = @transform_2, window_bounds = array<i64: 1, 1, 9>}, {pipeline_mode = #tpu.pipeline_mode<synchronous>, transform_indices = @transform_3, window_bounds = array<i64: 144, 18>}, {pipeline_mode = #tpu.pipeline_mode<synchronous>, transform_indices = @transform_4, window_bounds = array<i64: 16, 256>}, {pipeline_mode = #tpu.pipeline_mode<synchronous>, transform_indices = @transform_5, window_bounds = array<i64: 432, 225>}, {transform_indices = @transform_6, window_bounds = array<i64: 1, 4, 128>}]} {
    %c0 = arith.constant 0 : index
    %c0_0 = arith.constant 0 : index
    %0 = vector.load %arg5[%c0, %c0_0] : memref<16x256xf32, #tpu.memory_space<vmem>>, vector<10x16xf32>
    %c10 = arith.constant 10 : index
    %c0_1 = arith.constant 0 : index
    %1 = vector.load %arg5[%c10, %c0_1] : memref<16x256xf32, #tpu.memory_space<vmem>>, vector<1x16xf32>
    %c11 = arith.constant 11 : index
    %c0_2 = arith.constant 0 : index
    %2 = vector.load %arg5[%c11, %c0_2] : memref<16x256xf32, #tpu.memory_space<vmem>>, vector<1x18xf32>
    %c12 = arith.constant 12 : index
    %c0_3 = arith.constant 0 : index
    %3 = vector.load %arg5[%c12, %c0_3] : memref<16x256xf32, #tpu.memory_space<vmem>>, vector<1x225xf32>
    %c13 = arith.constant 13 : index
    %c0_4 = arith.constant 0 : index
    %4 = vector.load %arg5[%c13, %c0_4] : memref<16x256xf32, #tpu.memory_space<vmem>>, vector<1x75xf32>
    %c14 = arith.constant 14 : index
    %c0_5 = arith.constant 0 : index
    %5 = vector.load %arg5[%c14, %c0_5] : memref<16x256xf32, #tpu.memory_space<vmem>>, vector<1x75xf32>
    %c15 = arith.constant 15 : index
    %c0_6 = arith.constant 0 : index
    %6 = vector.load %arg5[%c15, %c0_6] : memref<16x256xf32, #tpu.memory_space<vmem>>, vector<1x171xf32>
    %c0_7 = arith.constant 0 : index
    %c0_8 = arith.constant 0 : index
    %c0_9 = arith.constant 0 : index
    %7 = vector.load %arg1[%c0_7, %c0_8, %c0_9] : memref<1x9x9xf32, #tpu.memory_space<vmem>>, vector<1x9x9xf32>
    %8 = vector.shape_cast %7 : vector<1x9x9xf32> to vector<9x9xf32>
    %c0_10 = arith.constant 0 : index
    %c0_11 = arith.constant 0 : index
    %c0_12 = arith.constant 0 : index
    %9 = vector.load %arg2[%c0_10, %c0_11, %c0_12] : memref<1x9x10xf32, #tpu.memory_space<vmem>>, vector<1x9x10xf32>
    %10 = vector.shape_cast %9 : vector<1x9x10xf32> to vector<9x10xf32>
    %cst = arith.constant dense<0.000000e+00> : vector<9x10xf32>
    %11 = tpu.matmul %8, %10, %cst {dimension_numbers = #tpu.dot_dimension_numbers<[1], [0], [0], [1], [0, 0, 1, 1], [], []>} : vector<9x9xf32>, vector<9x10xf32>, vector<9x10xf32> -> vector<9x10xf32>
    %cst_13 = arith.constant dense<0.000000e+00> : vector<9x16xf32>
    %12 = tpu.matmul %11, %0, %cst_13 {dimension_numbers = #tpu.dot_dimension_numbers<[1], [0], [0], [1], [0, 0, 1, 1], [], []>} : vector<9x10xf32>, vector<10x16xf32>, vector<9x16xf32> -> vector<9x16xf32>
    %13 = vector.broadcast %1 : vector<1x16xf32> to vector<9x16xf32>
    %14 = arith.addf %12, %13 : vector<9x16xf32>
    %cst_14 = arith.constant 0.000000e+00 : f32
    %15 = vector.broadcast %cst_14 : f32 to vector<9x16xf32>
    %16 = arith.maximumf %14, %15 : vector<9x16xf32>
    %17 = vector.extract_strided_slice %16 {offsets = [0, 0], sizes = [1, 16], strides = [1, 1]} : vector<9x16xf32> to vector<1x16xf32>
    %c0_15 = arith.constant 0 : index
    %c0_16 = arith.constant 0 : index
    %18 = vector.load %arg8[%c0_15, %c0_16] : memref<1x144xf32, #tpu.memory_space<vmem>>, vector<1x16xf32>
    tpu.vector_store %arg8[%c0_15, %c0_16], %17 {strides = array<i32>} : memref<1x144xf32, #tpu.memory_space<vmem>>, vector<1x16xf32>,
    %19 = vector.extract_strided_slice %16 {offsets = [1, 0], sizes = [1, 16], strides = [1, 1]} : vector<9x16xf32> to vector<1x16xf32>
    %c0_17 = arith.constant 0 : index
    %c16 = arith.constant 16 : index
    %20 = vector.load %arg8[%c0_17, %c16] : memref<1x144xf32, #tpu.memory_space<vmem>>, vector<1x16xf32>
    tpu.vector_store %arg8[%c0_17, %c16], %19 {strides = array<i32>} : memref<1x144xf32, #tpu.memory_space<vmem>>, vector<1x16xf32>,
    %21 = vector.extract_strided_slice %16 {offsets = [2, 0], sizes = [1, 16], strides = [1, 1]} : vector<9x16xf32> to vector<1x16xf32>
    %c0_18 = arith.constant 0 : index
    %c32 = arith.constant 32 : index
    %22 = vector.load %arg8[%c0_18, %c32] : memref<1x144xf32, #tpu.memory_space<vmem>>, vector<1x16xf32>
    tpu.vector_store %arg8[%c0_18, %c32], %21 {strides = array<i32>} : memref<1x144xf32, #tpu.memory_space<vmem>>, vector<1x16xf32>,
    %23 = vector.extract_strided_slice %16 {offsets = [3, 0], sizes = [1, 16], strides = [1, 1]} : vector<9x16xf32> to vector<1x16xf32>
    %c0_19 = arith.constant 0 : index
    %c48 = arith.constant 48 : index
    %24 = vector.load %arg8[%c0_19, %c48] : memref<1x144xf32, #tpu.memory_space<vmem>>, vector<1x16xf32>
    tpu.vector_store %arg8[%c0_19, %c48], %23 {strides = array<i32>} : memref<1x144xf32, #tpu.memory_space<vmem>>, vector<1x16xf32>,
    %25 = vector.extract_strided_slice %16 {offsets = [4, 0], sizes = [1, 16], strides = [1, 1]} : vector<9x16xf32> to vector<1x16xf32>
    %c0_20 = arith.constant 0 : index
    %c64 = arith.constant 64 : index
    %26 = vector.load %arg8[%c0_20, %c64] : memref<1x144xf32, #tpu.memory_space<vmem>>, vector<1x16xf32>
    tpu.vector_store %arg8[%c0_20, %c64], %25 {strides = array<i32>} : memref<1x144xf32, #tpu.memory_space<vmem>>, vector<1x16xf32>,
    %27 = vector.extract_strided_slice %16 {offsets = [5, 0], sizes = [1, 16], strides = [1, 1]} : vector<9x16xf32> to vector<1x16xf32>
    %c0_21 = arith.constant 0 : index
    %c80 = arith.constant 80 : index
    %28 = vector.load %arg8[%c0_21, %c80] : memref<1x144xf32, #tpu.memory_space<vmem>>, vector<1x16xf32>
    tpu.vector_store %arg8[%c0_21, %c80], %27 {strides = array<i32>} : memref<1x144xf32, #tpu.memory_space<vmem>>, vector<1x16xf32>,
    %29 = vector.extract_strided_slice %16 {offsets = [6, 0], sizes = [1, 16], strides = [1, 1]} : vector<9x16xf32> to vector<1x16xf32>
    %c0_22 = arith.constant 0 : index
    %c96 = arith.constant 96 : index
    %30 = vector.load %arg8[%c0_22, %c96] : memref<1x144xf32, #tpu.memory_space<vmem>>, vector<1x16xf32>
    tpu.vector_store %arg8[%c0_22, %c96], %29 {strides = array<i32>} : memref<1x144xf32, #tpu.memory_space<vmem>>, vector<1x16xf32>,
    %31 = vector.extract_strided_slice %16 {offsets = [7, 0], sizes = [1, 16], strides = [1, 1]} : vector<9x16xf32> to vector<1x16xf32>
    %c0_23 = arith.constant 0 : index
    %c112 = arith.constant 112 : index
    %32 = vector.load %arg8[%c0_23, %c112] : memref<1x144xf32, #tpu.memory_space<vmem>>, vector<1x16xf32>
    tpu.vector_store %arg8[%c0_23, %c112], %31 {strides = array<i32>} : memref<1x144xf32, #tpu.memory_space<vmem>>, vector<1x16xf32>,
    %33 = vector.extract_strided_slice %16 {offsets = [8, 0], sizes = [1, 16], strides = [1, 1]} : vector<9x16xf32> to vector<1x16xf32>
    %c0_24 = arith.constant 0 : index
    %c128 = arith.constant 128 : index
    %34 = vector.load %arg8[%c0_24, %c128] : memref<1x144xf32, #tpu.memory_space<vmem>>, vector<1x16xf32>
    tpu.vector_store %arg8[%c0_24, %c128], %33 {strides = array<i32>} : memref<1x144xf32, #tpu.memory_space<vmem>>, vector<1x16xf32>,
    %c0_25 = arith.constant 0 : index
    %c0_26 = arith.constant 0 : index
    %35 = vector.load %arg8[%c0_25, %c0_26] : memref<1x144xf32, #tpu.memory_space<vmem>>, vector<1x144xf32>
    %c0_27 = arith.constant 0 : index
    %c0_28 = arith.constant 0 : index
    %36 = vector.load %arg4[%c0_27, %c0_28] : memref<144x18xf32, #tpu.memory_space<vmem>>, vector<144x18xf32>
    %cst_29 = arith.constant dense<0.000000e+00> : vector<1x18xf32>
    %37 = tpu.matmul %35, %36, %cst_29 {dimension_numbers = #tpu.dot_dimension_numbers<[1], [0], [0], [1], [0, 0, 1, 1], [], []>} : vector<1x144xf32>, vector<144x18xf32>, vector<1x18xf32> -> vector<1x18xf32>
    %38 = arith.addf %37, %2 : vector<1x18xf32>
    %39 = vector.extract_strided_slice %38 {offsets = [0, 0], sizes = [1, 9], strides = [1, 1]} : vector<1x18xf32> to vector<1x9xf32>
    %40 = vector.extract_strided_slice %38 {offsets = [0, 9], sizes = [1, 9], strides = [1, 1]} : vector<1x18xf32> to vector<1x9xf32>
    %c0_30 = arith.constant 0 : index
    %c0_31 = arith.constant 0 : index
    %c0_32 = arith.constant 0 : index
    %41 = vector.load %arg3[%c0_30, %c0_31, %c0_32] : memref<1x1x9xf32, #tpu.memory_space<vmem>>, vector<1x1x9xf32>
    %42 = vector.shape_cast %41 : vector<1x1x9xf32> to vector<1x9xf32>
    %cst_33 = arith.constant 5.000000e-01 : f32
    %43 = vector.broadcast %cst_33 : f32 to vector<1x9xf32>
    %44 = arith.mulf %43, %40 : vector<1x9xf32>
    %45 = math.exp %44 : vector<1x9xf32>
    %46 = arith.mulf %42, %45 : vector<1x9xf32>
    %47 = arith.addf %39, %46 : vector<1x9xf32>
    %48 = vector.extract_strided_slice %16 {offsets = [0, 0], sizes = [1, 16], strides = [1, 1]} : vector<9x16xf32> to vector<1x16xf32>
    %cst_34 = arith.constant 0.000000e+00 : f32
    %49 = vector.broadcast %cst_34 : f32 to vector<1x16xf32>
    %50 = arith.cmpf one, %48, %49 : vector<1x16xf32>
    %51 = arith.extui %50 : vector<1x16xi1> to vector<1x16xi32>
    %52 = arith.sitofp %51 : vector<1x16xi32> to vector<1x16xf32>
    %53 = arith.truncf %47 : vector<1x9xf32> to vector<1x9xbf16>
    %c0_35 = arith.constant 0 : index
    %c0_36 = arith.constant 0 : index
    %54 = vector.load %arg6[%c0_35, %c0_36] : memref<432x225xbf16, #tpu.memory_space<vmem>>, vector<9x225xbf16>
    %cst_37 = arith.constant dense<0.000000e+00> : vector<1x225xf32>
    %55 = tpu.matmul %53, %54, %cst_37 {dimension_numbers = #tpu.dot_dimension_numbers<[1], [0], [0], [1], [0, 0, 1, 1], [], []>} : vector<1x9xbf16>, vector<9x225xbf16>, vector<1x225xf32> -> vector<1x225xf32>
    %56 = arith.truncf %52 : vector<1x16xf32> to vector<1x16xbf16>
    %c16_38 = arith.constant 16 : index
    %c0_39 = arith.constant 0 : index
    %57 = vector.load %arg6[%c16_38, %c0_39] : memref<432x225xbf16, #tpu.memory_space<vmem>>, vector<16x225xbf16>
    %cst_40 = arith.constant dense<0.000000e+00> : vector<1x225xf32>
    %58 = tpu.matmul %56, %57, %cst_40 {dimension_numbers = #tpu.dot_dimension_numbers<[1], [0], [0], [1], [0, 0, 1, 1], [], []>} : vector<1x16xbf16>, vector<16x225xbf16>, vector<1x225xf32> -> vector<1x225xf32>
    %59 = arith.addf %55, %58 : vector<1x225xf32>
    %60 = arith.addf %59, %3 : vector<1x225xf32>
    %61 = arith.truncf %60 : vector<1x225xf32> to vector<1x225xbf16>
    %c32_41 = arith.constant 32 : index
    %c0_42 = arith.constant 0 : index
    %62 = vector.load %arg6[%c32_41, %c0_42] : memref<432x225xbf16, #tpu.memory_space<vmem>>, vector<225x75xbf16>
    %cst_43 = arith.constant dense<0.000000e+00> : vector<1x75xf32>
    %63 = tpu.matmul %61, %62, %cst_43 {dimension_numbers = #tpu.dot_dimension_numbers<[1], [0], [0], [1], [0, 0, 1, 1], [], []>} : vector<1x225xbf16>, vector<225x75xbf16>, vector<1x75xf32> -> vector<1x75xf32>
    %64 = arith.addf %63, %4 : vector<1x75xf32>
    %cst_44 = arith.constant 0.000000e+00 : f32
    %65 = vector.broadcast %cst_44 : f32 to vector<1x75xf32>
    %66 = arith.maximumf %64, %65 : vector<1x75xf32>
    %67 = arith.truncf %66 : vector<1x75xf32> to vector<1x75xbf16>
    %c272 = arith.constant 272 : index
    %c0_45 = arith.constant 0 : index
    %68 = vector.load %arg6[%c272, %c0_45] : memref<432x225xbf16, #tpu.memory_space<vmem>>, vector<75x75xbf16>
    %cst_46 = arith.constant dense<0.000000e+00> : vector<1x75xf32>
    %69 = tpu.matmul %67, %68, %cst_46 {dimension_numbers = #tpu.dot_dimension_numbers<[1], [0], [0], [1], [0, 0, 1, 1], [], []>} : vector<1x75xbf16>, vector<75x75xbf16>, vector<1x75xf32> -> vector<1x75xf32>
    %70 = arith.addf %69, %5 : vector<1x75xf32>
    %cst_47 = arith.constant 0.000000e+00 : f32
    %71 = vector.broadcast %cst_47 : f32 to vector<1x75xf32>
    %72 = arith.maximumf %70, %71 : vector<1x75xf32>
    %73 = arith.truncf %72 : vector<1x75xf32> to vector<1x75xbf16>
    %c352 = arith.constant 352 : index
    %c0_48 = arith.constant 0 : index
    %74 = vector.load %arg6[%c352, %c0_48] : memref<432x225xbf16, #tpu.memory_space<vmem>>, vector<75x171xbf16>
    %cst_49 = arith.constant dense<0.000000e+00> : vector<1x171xf32>
    %75 = tpu.matmul %73, %74, %cst_49 {dimension_numbers = #tpu.dot_dimension_numbers<[1], [0], [0], [1], [0, 0, 1, 1], [], []>} : vector<1x75xbf16>, vector<75x171xbf16>, vector<1x171xf32> -> vector<1x171xf32>
    %76 = arith.addf %75, %6 : vector<1x171xf32>
    %77 = vector.extract_strided_slice %76 {offsets = [0, 0], sizes = [1, 81], strides = [1, 1]} : vector<1x171xf32> to vector<1x81xf32>
    %78 = vector.extract_strided_slice %76 {offsets = [0, 81], sizes = [1, 90], strides = [1, 1]} : vector<1x171xf32> to vector<1x90xf32>
    %cst_50 = arith.constant 0.000000e+00 : f32
    %79 = vector.broadcast %cst_50 : f32 to vector<1x81xf32>
    %80 = arith.subf %79, %77 : vector<1x81xf32>
    %81 = math.exp %80 : vector<1x81xf32>
    %cst_51 = arith.constant 1.000000e+00 : f32
    %82 = vector.broadcast %cst_51 : f32 to vector<1x81xf32>
    %83 = arith.addf %82, %81 : vector<1x81xf32>
    %cst_52 = arith.constant 1.000000e+00 : f32
    %84 = vector.broadcast %cst_52 : f32 to vector<1x81xf32>
    %85 = arith.divf %84, %83 : vector<1x81xf32>
    %cst_53 = arith.constant dense<0xFF800000> : vector<1xf32>
    %86 = vector.multi_reduction <maximumf>, %78, %cst_53 [1] : vector<1x90xf32> to vector<1xf32>
    %87 = vector.shape_cast %86 : vector<1xf32> to vector<1x1xf32>
    %88 = vector.broadcast %87 : vector<1x1xf32> to vector<1x90xf32>
    %89 = arith.subf %78, %88 : vector<1x90xf32>
    %90 = math.exp %89 : vector<1x90xf32>
    %cst_54 = arith.constant dense<0.000000e+00> : vector<1xf32>
    %91 = vector.multi_reduction <add>, %90, %cst_54 [1] : vector<1x90xf32> to vector<1xf32>
    %92 = vector.shape_cast %91 : vector<1xf32> to vector<1x1xf32>
    %93 = vector.broadcast %92 : vector<1x1xf32> to vector<1x90xf32>
    %94 = arith.divf %90, %93 : vector<1x90xf32>
    %cst_55 = arith.constant 0.000000e+00 : f32
    %95 = vector.broadcast %cst_55 : f32 to vector<4x128xf32>
    %c0_56 = arith.constant 0 : index
    %c0_57 = arith.constant 0 : index
    %c0_58 = arith.constant 0 : index
    %96 = vector.load %arg7[%c0_56, %c0_57, %c0_58] : memref<1x4x128xf32, #tpu.memory_space<vmem>>, vector<1x4x128xf32>
    %97 = vector.shape_cast %96 : vector<1x4x128xf32> to vector<4x128xf32>
    %98 = vector.shape_cast %95 : vector<4x128xf32> to vector<1x4x128xf32>
    tpu.vector_store %arg7[%c0_56, %c0_57, %c0_58], %98 {strides = array<i32>} : memref<1x4x128xf32, #tpu.memory_space<vmem>>, vector<1x4x128xf32>,
    %c0_59 = arith.constant 0 : index
    %c0_60 = arith.constant 0 : index
    %c0_61 = arith.constant 0 : index
    %99 = vector.load %arg7[%c0_59, %c0_60, %c0_61] : memref<1x4x128xf32, #tpu.memory_space<vmem>>, vector<1x1x81xf32>
    %100 = vector.shape_cast %99 : vector<1x1x81xf32> to vector<1x81xf32>
    %101 = vector.shape_cast %85 : vector<1x81xf32> to vector<1x1x81xf32>
    tpu.vector_store %arg7[%c0_59, %c0_60, %c0_61], %101 {strides = array<i32>} : memref<1x4x128xf32, #tpu.memory_space<vmem>>, vector<1x1x81xf32>,
    %c0_62 = arith.constant 0 : index
    %c1 = arith.constant 1 : index
    %c0_63 = arith.constant 0 : index
    %102 = vector.load %arg7[%c0_62, %c1, %c0_63] : memref<1x4x128xf32, #tpu.memory_space<vmem>>, vector<1x1x90xf32>
    %103 = vector.shape_cast %102 : vector<1x1x90xf32> to vector<1x90xf32>
    %104 = vector.shape_cast %94 : vector<1x90xf32> to vector<1x1x90xf32>
    tpu.vector_store %arg7[%c0_62, %c1, %c0_63], %104 {strides = array<i32>} : memref<1x4x128xf32, #tpu.memory_space<vmem>>, vector<1x1x90xf32>,
    %c0_64 = arith.constant 0 : index
    %c2 = arith.constant 2 : index
    %c0_65 = arith.constant 0 : index
    %105 = vector.load %arg7[%c0_64, %c2, %c0_65] : memref<1x4x128xf32, #tpu.memory_space<vmem>>, vector<1x1x9xf32>
    %106 = vector.shape_cast %105 : vector<1x1x9xf32> to vector<1x9xf32>
    %107 = vector.shape_cast %39 : vector<1x9xf32> to vector<1x1x9xf32>
    tpu.vector_store %arg7[%c0_64, %c2, %c0_65], %107 {strides = array<i32>} : memref<1x4x128xf32, #tpu.memory_space<vmem>>, vector<1x1x9xf32>,
    %c0_66 = arith.constant 0 : index
    %c3 = arith.constant 3 : index
    %c0_67 = arith.constant 0 : index
    %108 = vector.load %arg7[%c0_66, %c3, %c0_67] : memref<1x4x128xf32, #tpu.memory_space<vmem>>, vector<1x1x9xf32>
    %109 = vector.shape_cast %108 : vector<1x1x9xf32> to vector<1x9xf32>
    %110 = vector.shape_cast %40 : vector<1x9xf32> to vector<1x1x9xf32>
    tpu.vector_store %arg7[%c0_66, %c3, %c0_67], %110 {strides = array<i32>} : memref<1x4x128xf32, #tpu.memory_space<vmem>>, vector<1x1x9xf32>,
    return
  }
  func.func @transform_0(%arg0: i32) -> (i32, i32, i32) {
    %c0_i32 = arith.constant 0 : i32
    %c0_i32_0 = arith.constant 0 : i32
    %c0_i32_1 = arith.constant 0 : i32
    return %arg0, %c0_i32, %c0_i32_0 : i32, i32, i32
  }
  func.func @transform_1(%arg0: i32) -> (i32, i32, i32) {
    %c0_i32 = arith.constant 0 : i32
    %c0_i32_0 = arith.constant 0 : i32
    %c0_i32_1 = arith.constant 0 : i32
    return %arg0, %c0_i32, %c0_i32_0 : i32, i32, i32
  }
  func.func @transform_2(%arg0: i32) -> (i32, i32, i32) {
    %c0_i32 = arith.constant 0 : i32
    %c0_i32_0 = arith.constant 0 : i32
    %c0_i32_1 = arith.constant 0 : i32
    return %arg0, %c0_i32, %c0_i32_0 : i32, i32, i32
  }
  func.func @transform_3(%arg0: i32) -> (i32, i32) {
    %c0_i32 = arith.constant 0 : i32
    %c0_i32_0 = arith.constant 0 : i32
    %c0_i32_1 = arith.constant 0 : i32
    return %c0_i32, %c0_i32_0 : i32, i32
  }
  func.func @transform_4(%arg0: i32) -> (i32, i32) {
    %c0_i32 = arith.constant 0 : i32
    %c0_i32_0 = arith.constant 0 : i32
    %c0_i32_1 = arith.constant 0 : i32
    return %c0_i32, %c0_i32_0 : i32, i32
  }
  func.func @transform_5(%arg0: i32) -> (i32, i32) {
    %c0_i32 = arith.constant 0 : i32
    %c0_i32_0 = arith.constant 0 : i32
    %c0_i32_1 = arith.constant 0 : i32
    return %c0_i32, %c0_i32_0 : i32, i32
  }
  func.func @transform_6(%arg0: i32) -> (i32, i32, i32) {
    %c0_i32 = arith.constant 0 : i32
    %c0_i32_0 = arith.constant 0 : i32
    %c0_i32_1 = arith.constant 0 : i32
    return %arg0, %c0_i32, %c0_i32_0 : i32, i32, i32
  }
}

</mosaic_0001>

<bundles_post_ra>
// kernel: tpu_custom_call.1
= control target key start
LH: loop header
LB: loop body
LE: loop exit
PB: predicated region body
PF: predicated region fallthrough
CT: control target
= control target key end

     0   :  { %11 = vsyncpa [#allocation4], 0  ;;  %s2189_s0 = inlined_call_operand.vmem [shape: f32[4,9,9], index: 0, kind: input, shape index: {}]   ;;  %s2190_s1 = inlined_call_operand.vmem [shape: f32[4,9,10], index: 1, kind: input, shape index: {}]   ;;  %s2191_s2 = inlined_call_operand.vmem [shape: f32[4,1,9], index: 2, kind: input, shape index: {}]   ;;  %s2192_s3 = inlined_call_operand.vmem [shape: f32[144,18], index: 3, kind: input, shape index: {}]   ;;  %s2193_s4 = inlined_call_operand.vmem [shape: f32[16,256], index: 4, kind: input, shape index: {}]   ;;  %s2194_s5 = inlined_call_operand.hbm [shape: bf16[432,225], index: 5, kind: input, shape index: {}]   ;;  %s2195_s6 = inlined_call_operand.hbm [shape: f32[4,4,128], index: 6, kind: output, shape index: {}]  }
   0x1   :  { %12 = vsyncpa [#allocation5], 0 }
   0x2   :  { %14 = vsyncpa [#allocation5 + $0x1], 0  ;;  %s1815_s21 = smov 0   ;;  %s1817_s22 = smov 0  }
   0x3   :  { %s1819_s23 = smov 0   ;;  %s1821_s24 = smov 0  }
   0x4 LB: > { %s1836_s25 = sadd.s32 4294967295, %s1758_s24   ;;  %s1396_s26 = sadd.s32 4294967294, %s1758_s24   ;;  %s1758_s24 = sphi %s1821_s24, %s2221_s24   ;;  %s1754_s23 = sphi %s1819_s23, %s2220_s23   ;;  %s1750_s22 = sphi %s1817_s22, %s2219_s22   ;;  %s1746_s21 = sphi %s1815_s21, %s2218_s21  }
   0x5   : > { %s1840_s27 = sadd.s32 1, %s1758_s24   ;;  %s168_s28 = sadd.s32 1, %s1754_s23 }
   0x6   : > { %s165_s29 = ssub.s32 %s1758_s24, %s1840_s27  ;;  %p178_p0 = scmp.ne.s32.totalorder %s1754_s23, %s1750_s22 }
   0x7   : > { %p166_p1 = scmp.eq.s32.totalorder %s165_s29, 0  ;;  %p179_p2 = scmp.eq.s32.totalorder %s1836_s25, 3 }
   0x8   : > { %p184_p3 = scmp.ne.s32.totalorder %s1750_s22, %s1746_s21  ;;  %p185_p4 = scmp.eq.s32.totalorder %s1396_s26, 3 }
   0x9   : > { %s1851_s30 = scalar_select %p166_p1, %s1754_s23, %s168_s28  }
   0xa   : > { %p1853_p5 = por %p179_p2, %p178_p0  ;;  %p1857_p6 = por %p185_p4, %p184_p3 }
   0xb   : > { %p1397_p7 = scmp.ge.s32.totalorder %s1758_s24, 1  ;;  %p192_p8 = scmp.lt.s32.totalorder %s1758_s24, 5 }
   0xc   : > { %s2199_s7 = scalar_select %p1853_p5, 1, 0 }
   0xd   : > { %s2200_s8 = scalar_select %p1857_p6, 1, 0 }
   0xe   : > { %p2196_p9 = scmp.eq.s32.totalorder %s1836_s25, 0  ;;  %p1864_p10 = pnand %p1397_p7, %p192_p8 }
   0xf   : > { %s1760_s10 = smov [#allocation3]   ;;  %s1664_s15 = scalar_lea.hbm %s2194_s5, 6912 }
  0x10   : > { %s2201_s9 = scalar_select %p1864_p10, 1, 0 }
  0x11   : > { %s210_s11 = sshll.u32 %s1760_s10, 4  ;;  %p1549_p11 = pneg %p1864_p10  ;;  %s211_s11 = int_to_ptr.vmem [resolvable:$true] %s210_s11 }
  0x12   : > { %p1665_p13 = scmp.ne.s32.totalorder %s2194_s5, %s1664_s15  ;;  %p1671_p3 = scmp.lt.u32.totalorder %s1664_s15, %s2194_s5 }
  0x13   : > { %p1872_p12 = pnand %p2196_p9, %p1549_p11 }
  0x15   : > { %p1666_p0 = pneg %p1872_p12 }
  0x17   : > { %p1667_p1 = pnand %p1666_p0, %p1665_p13 }
  0x19   : > { %p1668_p2 = pneg %p1667_p1 }
  0x1b   : > { %p1673_p4 = pnand %p1671_p3, %p1668_p2 }
  0x1d   : > { %1676 = shalt.err (!%p1673_p4)
}
  0x1e   : > { %s1677_s20 = scalar_lea.vmem %s211_s11, 6912  ;;  %p1685_p9 = scmp.lt.s32.totalorder %s211_s11, %s211_s11 }
  0x1f   : > { %p1678_p7 = scmp.ne.s32.totalorder %s211_s11, %s1677_s20  ;;  %p1686_p6 = scmp.lt.s32.totalorder %s1677_s20, %s1677_s20 }
  0x21   : > { %p1680_p8 = pnand %p1678_p7, %p1666_p0  ;;  %p1687_p5 = por %p1686_p6, %p1685_p9 }
  0x23   : > { %p1681_p11 = pneg %p1680_p8 }
  0x25   : > { %p1688_p10 = pnand %p1687_p5, %p1681_p11 }
  0x27   : > { %1691 = shalt.err (!%p1688_p10)
}
  0x28   : > { %s1761_s26 = smov 128   ;;  %s1762_s28 = smov 8  }
  0x29   : > { %1552 = dma.hbm_to_vmem [thread:$0]  (!%p1872_p12), %s2194_s5, 6912, %s211_s11, [#allocation4], %s1761_s26, %s1761_s26, %s1762_s28  }
  0x2a   : > { %p2203_p13 = scmp.ne.s32.totalorder %s2201_s9, 0 }
  0x2b   : > { %p2204_p1 = scmp.eq.s32.totalorder (!%p2203_p13), %s1836_s25, 0 }
  0x2c   : > { %248 = sbr.rel (%p2203_p13) target bundleno = 2434 (0x982), region = 44 }
  0x33   : > { %1737 = dma.done.wait (%p2204_p1), [#allocation4], 6912   ;;  %p2205_p0 = pmov %p2204_p1 }
  0x34   : > { %p286_p5 = scmp.lt.s32.totalorder %s1836_s25, 3  ;;  %vm321_vm0 = vcmask 1040384   ;;  %vm407_vm1 = vcmask 1041408   ;;  %vm1763_vm2 = vmmov 1   ;;  %vm314_vm4 = vcmask 72704   ;;  %v300_v5 = vld [vmem:[%s2193_s4] sm:$0xff] }
  0x35   : > { %1739 = vsyncadd (%p2205_p0), [#allocation4], 4294960384  ;;  %v301_v6 = vld [vmem:[%s2193_s4 + $0x10] sm:$0x3]  ;;  %vm400_vm6 = vcmask 80896   ;;  %v1764_v10 = vmov 0   ;;  %v488_v23 = vlaneseq }
  0x36   : > { %s1900_s13 = scalar_select %p286_p5, %s1836_s25, 3  ;;  %vm1505_vm3 = vmpackc.low %vm321_vm0, %vm1763_vm2  ;;  %v1510_v7 = vpack.c.bf16 %v301_v6, %v300_v5  ;;  %v1614_v11 = vld [vmem:[#allocation3 + $0x14] ss:$8 sps:$4 sm:$0xff]   ;;  %v1612_v12 = vld [vmem:[#allocation3 + $0x10] ss:$8 sps:$4 sm:$0xff]   ;;  %v1765_v16 = vmov 0.0|0.0  }
  0x37   : > { %vm1511_vm5 = vmpackc.low %vm407_vm1, %vm1763_vm2  ;;  %v594_v13 = vld [vmem:[%s2192_s3] sm:$0xff]  ;;  %v595_v14 = vld [vmem:[%s2192_s3 + $0x8] sm:$0xff]  ;;  %v1766_v24 = vmov 1966171168   ;;  %v1951_v31 = vshrl.u32 %v488_v23, 7  ;;  %vm490_vm7 = vcmp.lt.s32.totalorder %v488_v23, 16 }
  0x38   : > { %s1460_s12 = sshll.u32 %s1900_s13, 4  ;;  %1512 = vmatprep.subr.msk.bf16.mxu1 %vm1511_vm5, %v1510_v7  ;;  %v596_v15 = vld [vmem:[%s2192_s3 + $0x10] sm:$0xff]  ;;  %v1517_v17 = vpack.c.bf16 %v595_v14, %v594_v13  ;;  %v597_v18 = vld [vmem:[%s2192_s3 + $0x18] sm:$0xff]  ;;  %v598_v20 = vld [vmem:[%s2192_s3 + $0x20] sm:$0xff]  ;;  %v495_v25 = vunpack.c.l.s4 %v1766_v24  ;;  %v1767_v47 = vmov 0.0   ;;  %vm622_vm9 = vcmask 130048   ;;  %s298_s19 = scalar_lea.vmem %s2191_s2, %s1900_s13 }
  0x39   : > { %s295_s11 = scalar_lea.vmem %s2190_s1, %s1460_s12  ;;  %s290_s17 = scalar_lea.vmem %s2189_s0, %s1460_s12  ;;  %1515 = vmatpush3.bf16.msk.msra.mxu1 %vm1511_vm5, %v1510_v7  ;;  %v1520_v19 = vpack.c.bf16 %v597_v18, %v596_v15  ;;  %v599_v21 = vld [vmem:[%s2192_s3 + $0x28] sm:$0xff]  ;;  %v600_v26 = vld [vmem:[%s2192_s3 + $0x30] sm:$0xff]  ;;  %v601_v27 = vld [vmem:[%s2192_s3 + $0x38] sm:$0xff]  ;;  %vm519_vm10 = vcmp.ge.s32.totalorder %v488_v23, 16  ;;  %vm520_vm11 = vcmp.lt.s32.totalorder %v488_v23, 32  ;;  %vm2005_vm13 = vcmp.ge.s32.totalorder %v488_v23, 32 }
  0x3a   : > { %v312_v0 = vld [vmem:[%s295_s11] sm:$0xff]  ;;  %v313_v1 = vld [vmem:[%s295_s11 + $0x8] sm:$0x1]  ;;  %741 = vmatprep.subr.bf16.mxu1 %v1614_v11  ;;  %v1523_v22 = vpack.c.bf16 %v599_v21, %v598_v20  ;;  %v1526_v28 = vpack.c.bf16 %v601_v27, %v600_v26  ;;  %v302_v29 = vld [vmem:[%s2193_s4 + $0x12] ss:$0 sm:$0xff]  ;;  %v496_v30 = vunpack.c.0.s8 %v495_v25  ;;  %s1768_s11 = smov 64  }
  0x3b   : > { %v1504_v2 = vpack.c.bf16 %v313_v1, %v312_v0  ;;  %v310_v3 = vld [vmem:[%s290_s17] sm:$0xff]  ;;  %v311_v4 = vld [vmem:[%s290_s17 + $0x8] sm:$0x1]  ;;  %v604_v42 = vld [vmem:[%s2192_s3 + $0x50] sm:$0xff]  ;;  %s1769_s9 = smov 16   ;;  %s1770_s20 = smov 32  }
  0x3c   : > { %1480 = vmatprep.mubr.msk.f32.mxu0 %vm314_vm4, %v310_v3  ;;  %v602_v33 = vld [vmem:[%s2192_s3 + $0x40] sm:$0xff]  ;;  %v603_v34 = vld [vmem:[%s2192_s3 + $0x48] sm:$0xff]  ;;  %v1962_v39 = vsub.s32 %v496_v30, %v1951_v31  ;;  %v605_v43 = vld [vmem:[%s2192_s3 + $0x58] sm:$0xff]  ;;  %s1771_s26 = smov 48   ;;  %s1772_s28 = smov 80   ;;  %vm2010_vm14 = vcmp.lt.s32.totalorder %v488_v23, 48 }
  0x3d   : > { %1506 = vmatprep.subr.msk.bf16.mxu0 %vm1505_vm3, %v1504_v2  ;;  %v1529_v37 = vpack.c.bf16 %v603_v34, %v602_v33  ;;  %v1532_v44 = vpack.c.bf16 %v605_v43, %v604_v42  ;;  %v606_v52 = vld [vmem:[%s2192_s3 + $0x60] sm:$0xff]  ;;  %v607_v53 = vld [vmem:[%s2192_s3 + $0x68] sm:$0xff]  ;;  %v608_v58 = vld [vmem:[%s2192_s3 + $0x70] sm:$0xff]  ;;  %s1773_s29 = smov 96   ;;  %s1774_s10 = smov 112   ;;  %vm2015_vm15 = vcmp.ge.s32.totalorder %v488_v23, 48 }
  0x3e   : > { %1509 = vmatpush3.bf16.msk.msra.mxu0 %vm1505_vm3, %v1504_v2  ;;  %v1535_v54 = vpack.c.bf16 %v607_v53, %v606_v52  ;;  %v609_v59 = vld [vmem:[%s2192_s3 + $0x78] sm:$0xff]  ;;  %v610_v60 = vld [vmem:[%s2192_s3 + $0x80] sm:$0xff]  ;;  %v611_v61 = vld [vmem:[%s2192_s3 + $0x88] sm:$0xff]  ;;  %vm536_vm1 = vcmp.lt.s32.totalorder %v488_v23, 64  ;;  %vm557_vm2 = vcmp.ge.s32.totalorder %v488_v23, 64  ;;  %vm558_vm3 = vcmp.lt.s32.totalorder %v488_v23, 80 }
  0x3f   : > { %1516 = vmatprep.subr.bf16.mxu0 %v1765_v16  ;;  %v1538_v62 = vpack.c.bf16 %v609_v59, %v608_v58  ;;  %v1541_v2 = vpack.c.bf16 %v611_v61, %v610_v60  ;;  %vm521_vm12 = vmand %vm519_vm10, %vm520_vm11  ;;  %vm580_vm11 = vcmp.ge.s32.totalorder %v488_v23, 96  ;;  %v2050_v20 = vsub.s32 0, %v1951_v31  ;;  %s283_s12 = sand.u32 1, %s1750_s22   ;;  %s1776_s16 = smov 119   ;;  %v1619_v53 = vld [vmem:[#allocation3 + $0x30] ss:$8 sps:$4 sm:$0xff]  }
  0x40   : > { %vm529_vm5 = vmand %vm2005_vm13, %vm2010_vm14  ;;  %s1402_s14 = sshll.u32 %s283_s12, 2  ;;  %v1775_v30 = vmov 65535   ;;  %v1625_v58 = vld [vmem:[#allocation3 + $0x90] ss:$8 sps:$4 sm:$0xff]   ;;  %v1626_v59 = vld [vmem:[#allocation3 + $0xa0] ss:$8 sps:$4 sm:$0xff]  }
  0x41   : > { %1481 = vmatmul.mubr.msk.f32.vlgmr.msra.gmra.mrb[0].mxu0 %vm314_vm4, %v311_v4  ;;  %vm559_vm10 = vmand %vm557_vm2, %vm558_vm3  ;;  %s2062_s15 = scalar_lea.vmem [#allocation6], %s1402_s14  ;;  %vm793_vm3 = vcmask 1043456   ;;  %v1627_v60 = vld [vmem:[#allocation3 + $0xb0] ss:$8 sps:$4 sm:$0xff]   ;;  %v1628_v61 = vld [vmem:[#allocation3 + $0xc0] ss:$8 sps:$4 sm:$0xff]  }
  0x42   : > { %1518 = vmatpush1.bf16.msra.mxu0 %v1517_v17  ;;  %1271 = vst [vmem:[%s2062_s15] sm:$0xf] %v1767_v47  ;;  %v1634_v6 = vld [vmem:[#allocation3 + $0x130] ss:$8 sps:$4 sm:$0xff]   ;;  %s1457_s17 = sshll.u32 %s1836_s25, 6  ;;  %s1304_s18 = sshll.u32 %s2062_s15, 4  ;;  %s2145_s18 = int_to_ptr.vmem [resolvable:$true] %s1304_s18 }
  0x43   : > { %1519 = vmatprep.subr.bf16.mxu0 %v1765_v16  ;;  %v1407_v7 = vld [vmem:[%s2193_s4 + $0x14] ss:$8 sm:$0x3]  ;;  %s1291_s25 = scalar_lea.sflag [#allocation5], %s283_s12  ;;  %p2216_p9 = scmp.ne.s32.totalorder %s2199_s7, 0 }
  0x46   : > { %1521 = vmatpush1.bf16.msra.mxu0 %v1520_v19  ;;  %v2047_v19 = vsub.s32 1, %v1951_v31  ;;  %v795_v31 = vsel %vm793_vm3, 4294967295, %v1775_v30 }
  0x47   : > { %1522 = vmatprep.subr.bf16.mxu0 %v1765_v16 }
  0x48   : > { %v852_v11 = vrot.slane %v1407_v7, %v2047_v19 }
  0x4a   : > { %1524 = vmatpush1.bf16.msra.mxu0 %v1523_v22 }
  0x4b   : > { %1525 = vmatprep.subr.bf16.mxu0 %v1765_v16 }
  0x4e   : > { %1527 = vmatpush1.bf16.msra.mxu0 %v1526_v28  ;;  %v1615_v28 = vld [vmem:[#allocation3] ss:$8 sps:$4 sm:$0x1f]  }
  0x4f   : > { %1528 = vmatprep.subr.bf16.mxu0 %v1765_v16 }
  0x52   : > { %1530 = vmatpush1.bf16.msra.mxu0 %v1529_v37 }
  0x53   : > { %1531 = vmatprep.subr.bf16.mxu0 %v1765_v16 }
  0x56   : > { %1533 = vmatpush1.bf16.msra.mxu0 %v1532_v44 }
  0x57   : > { %1534 = vmatprep.subr.bf16.mxu0 %v1765_v16 }
  0x5a   : > { %1536 = vmatpush1.bf16.msra.mxu0 %v1535_v54  ;;  %v1621_v54 = vld [vmem:[#allocation3 + $0x50] ss:$8 sps:$4 sm:$0xff]  }
  0x5b   : > { %1537 = vmatprep.subr.bf16.mxu0 %v1765_v16 }
  0x5e   : > { %1539 = vmatpush1.bf16.msra.mxu0 %v1538_v62  ;;  %v1629_v62 = vld [vmem:[#allocation3 + $0xd0] ss:$8 sps:$4 sm:$0xff]  }
  0x5f   : > { %1540 = vmatprep.subr.bf16.mxu0 %v1765_v16 }
  0x62   : > { %1542 = vmatpush1.bf16.msra.mxu0 %v1541_v2  ;;  %v1631_v2 = vld [vmem:[#allocation3 + $0xf0] ss:$8 sps:$4 sm:$0xff]  }
  0x63   : > { %1490 = vmatprep.subr.bf16.mxu0 %v1767_v47 }
 0x114   : > { %v1482_v8 = vpop.f32.mrb[0].mxu0 }
 0x115   : > { %v391_v9 = vpop.f32.mrb[1].mxu0 }
 0x116   : > { %1487 = vmatprep.mubr.msk.f32.mxu1 %vm400_vm6, %v391_v9 }
 0x117   : > { %1488 = vmatmul.mubr.msk.f32.vlgmr.msra.gmra.mrb[0].mxu1 %vm400_vm6, %v1482_v8  ;;  %vm537_vm6 = vmand %vm2015_vm15, %vm536_vm1  ;;  %vm588_vm15 = vcmp.ge.s32.totalorder %v488_v23, 112  ;;  %vm589_vm1 = vcmp.lt.s32.totalorder %v488_v23, 128 }
 0x118   : > { %773 = vmatprep.mubr.bf16.mxu1 %v1764_v10  ;;  %742 = vmatpush1.bf16.msra.mxu1 %v1612_v12  ;;  %vm590_vm2 = vmand %vm588_vm15, %vm589_vm1 }
 0x1ea   : > { %v1489_v32 = vpop.f32.mrb[0].mxu1 }
 0x1eb   : > { %v483_v35 = vadd.f32 %v1489_v32, %v302_v29  ;;  %v477_v36 = vpop.f32.mrb[1].mxu1 }
 0x1ec   : > { %v478_v38 = vadd.f32 %v477_v36, %v302_v29  ;;  %v1617_v29 = vld [vmem:[#allocation3 + $0x4] ss:$8 sps:$4 sm:$0x1f]   ;;  %v303_v36 = vld [vmem:[%s2193_s4 + $0x13] ss:$0 sm:$0xff] }
 0x1ed   : > { %v487_v40 = vmax.f32 %v483_v35, 0.0 }
 0x1ee   : > { %v486_v41 = vmax.f32 %v478_v38, 0.0 }
 0x1ef   : > { %592 = vst.msk [vmem:[#allocation2 + $0x1] sm:$0x1] %vm490_vm7, %v487_v40 }
 0x1f0   : > { %vm719_vm8 = vcmp.ne.f32.partialorder %v486_v41, 0.0  ;;  %492 = vst.msk [vmem:[#allocation2] sm:$0x1] %vm490_vm7, %v486_v41  ;;  %v539_v45 = vcombine.high %v486_v41, %v486_v41  ;;  %v500_v46 = vrot.slane %v486_v41, %v1962_v39  ;;  %vm2029_vm7 = vcmp.ge.s32.totalorder %v488_v23, 80 }
 0x1f1   : > { %v1416_v48 = vsel %vm719_vm8, 1.0, %v1767_v47  ;;  %vm2034_vm8 = vcmp.lt.s32.totalorder %v488_v23, 96 }
 0x1f2   : > { %v725_v49 = vpack.c.bf16 %v1416_v48, %v1416_v48  ;;  %v546_v50 = vrot.slane %v539_v45, %v1962_v39  ;;  %v501_v51 = vcombine.high %v500_v46, %v500_v46  ;;  %v508_v57 = vrot.slane %v500_v46, %v1962_v39  ;;  %vm574_vm13 = vmand %vm2029_vm7, %vm2034_vm8  ;;  %v695_v46 = vld [vmem:[%s298_s19] sm:$0x1] }
 0x1f3   : > { %vm1065_vm7 = vcmask 613376   ;;  %vm1242_vm8 = vcmask 1041032  }
 0x1f4   : > { %1419 = vmatmul.mubr.msk.bf16.vlgmr.msra.gmra.mrb[4].mxu1 %vm622_vm9, %v725_v49  ;;  %v553_v55 = vrot.slane %v546_v50, %v1962_v39  ;;  %v515_v56 = vrot.slane %v501_v51, %v1962_v39  ;;  %v561_v63 = vcombine.high %v546_v50, %v546_v50  ;;  %v523_v1 = vcombine.high %v508_v57, %v508_v57  ;;  %v1618_v51 = vld [vmem:[#allocation3 + $0x20] ss:$8 sps:$4 sm:$0xff]  }
 0x1f5   : > { %835 = vmatprep.mubr.bf16.mxu1 %v1764_v10  ;;  %v1624_v57 = vld [vmem:[#allocation3 + $0x80] ss:$8 sps:$4 sm:$0xff]  }
 0x1f6   : > { %554 = vrot.lane.b32.xlu1 %v553_v55, %s1768_s11  ;;  %516 = vrot.lane.b32.xlu0 %v515_v56, %s1769_s9  ;;  %v531_v0 = vcombine.high %v515_v56, %v515_v56  ;;  %v576_v3 = vcombine.high %v553_v55, %v553_v55  ;;  %v568_v4 = vrot.slane %v561_v63, %v1962_v39  ;;  %v1622_v55 = vld [vmem:[#allocation3 + $0x60] ss:$8 sps:$4 sm:$0xff]   ;;  %v1623_v56 = vld [vmem:[#allocation3 + $0x70] ss:$8 sps:$4 sm:$0xff]   ;;  %s1778_s9 = smov 47  }
 0x1f7   : > { %v1630_v63 = vld [vmem:[#allocation3 + $0xe0] ss:$8 sps:$4 sm:$0xff]  }
 0x1f8   : > { %v584_v5 = vcombine.high %v568_v4, %v568_v4 }
 0x1fa   : > { %524 = vrot.lane.b32.xlu0 %v523_v1, %s1770_s20  ;;  %532 = vrot.lane.b32.xlu1 %v531_v0, %s1771_s26  ;;  %v1611_v0 = vld [vmem:[#allocation3 + $0x100] ss:$0 sps:$4 sm:$0x11]   ;;  %v980_v1 = vsel %vm321_vm0, 65535, %v1764_v10  ;;  %vm975_vm0 = vcmask 793600   ;;  %s2143_s20 = scalar_lea.hbm %s2195_s6, %s1457_s17  ;;  %s1779_s26 = smov [#allocation6]  }
 0x1fe   : > { %569 = vrot.lane.b32.xlu0 %v568_v4, %s1772_s28  ;;  %577 = vrot.lane.b32.xlu1 %v576_v3, %s1773_s29  ;;  %v982_v3 = vand.u32 %v1611_v0, %v980_v1  ;;  %v1632_v4 = vld [vmem:[#allocation3 + $0x110] ss:$8 sps:$4 sm:$0xff]   ;;  %s1696_s28 = sshll.u32 %s1779_s26, 4  ;;  %s1697_s28 = int_to_ptr.vmem [resolvable:$false] %s1696_s28 }
 0x1ff   : > { %s1698_s29 = scalar_lea.vmem %s1697_s28, 128  ;;  %p1699_p2 = scmp.lt.s32.totalorder %s2145_s18, %s1697_s28 }
 0x202   : > { %585 = vrot.lane.b32.xlu0 %v584_v5, %s1774_s10  ;;  %v1633_v5 = vld [vmem:[#allocation3 + $0x120] ss:$8 sps:$4 sm:$0xff]  }
 0x268   : > { %v555_v8 = vpop.permute.xlu1 %554  ;;  %v517_v9 = vpop.permute.xlu0 %516 }
 0x269   : > { %522 = vst.msk [vmem:[#allocation2] sm:$0x1] %vm521_vm12, %v517_v9  ;;  %vm581_vm12 = vcmp.lt.s32.totalorder %v488_v23, 112 }
 0x26a   : > { %vm582_vm14 = vmand %vm580_vm11, %vm581_vm12  ;;  %vm1272_vm11 = vcmask 655360   ;;  %vm1261_vm12 = vcmask 384000  }
 0x26c   : > { %v525_v14 = vpop.permute.xlu0 %524  ;;  %v533_v15 = vpop.permute.xlu1 %532 }
 0x26d   : > { %530 = vst.msk [vmem:[#allocation2] sm:$0x1] %vm529_vm5, %v525_v14  ;;  %vm794_vm5 = vcmask 1044480  }
 0x26e   : > { %538 = vst.msk [vmem:[#allocation2] sm:$0x1] %vm537_vm6, %v533_v15  ;;  %v2066_v32 = vsel %vm794_vm5, 4294967295, %v1775_v30  ;;  %v796_v33 = vsel %vm794_vm5, %v795_v31, 0  ;;  %vm1777_vm6 = vmmov 0  }
 0x26f   : > { %560 = vst.msk [vmem:[#allocation2] sm:$0x1] %vm559_vm10, %v555_v8  ;;  %v798_v34 = vand.u32 %v1615_v28, %v796_v33  ;;  %v801_v35 = vand.u32 %v1617_v29, %v796_v33  ;;  %v848_v8 = vrot.slane %v1407_v7, %v2050_v20  ;;  %v306_v28 = vld [vmem:[%s2193_s4 + $0x15] ss:$0 sm:$0xff]  ;;  %vm1244_vm10 = vcmask 344064  }
 0x270   : > { %v570_v16 = vpop.permute.xlu0 %569  ;;  %v578_v17 = vpop.permute.xlu1 %577 }
 0x271   : > { %575 = vst.msk [vmem:[#allocation2] sm:$0x1] %vm574_vm13, %v570_v16  ;;  %803 = vmatprep.subr.bf16.mxu1 %v801_v35  ;;  %v1637_v35 = vld [vmem:[#allocation3 + $0x160] ss:$8 sps:$4 sm:$0xff]   ;;  %vm1264_vm13 = vcmask 729088  }
 0x272   : > { %583 = vst.msk [vmem:[#allocation2] sm:$0x1] %vm582_vm14, %v578_v17  ;;  %804 = vmatpush1.bf16.msra.mxu1 %v798_v34 }
 0x273   : > { %984 = vmatprep.subr.bf16.mxu1 %v1764_v10 }
 0x274   : > { %v586_v18 = vpop.permute.xlu0 %585 }
 0x275   : > { %591 = vst.msk [vmem:[#allocation2] sm:$0x1] %vm590_vm2, %v586_v18 }
 0x27c   : > { %v593_v21 = vld [vmem:[#allocation2] sm:$0x3] }
 0x27d   : > { %v620_v22 = vrot.slane %v593_v21, %v2047_v19  ;;  %v616_v23 = vrot.slane %v593_v21, %v2050_v20 }
 0x27f   : > { %1415 = vmatprep.mubr.msk.f32.mxu0 %vm622_vm9, %v620_v22  ;;  %vm1283_vm9 = vcmask 65536  }
 0x280   : > { %690 = vmatmul.mubr.f32.vlgmr.msra.gmra.mrb[2].mxu0 %v616_v23  ;;  %v1635_v23 = vld [vmem:[#allocation3 + $0x140] ss:$8 sps:$4 sm:$0xff]  }
 0x281   : > { %1491 = vmatpush3.bf16.msra.mxu0 %v1632_v4  ;;  %1500 = vmatprep.mubr.msk.bf16.mxu0 %vm1777_vm6, %v1767_v47 }
 0x282   : > { %1492 = vmatprep.subr.bf16.mxu0 %v1767_v47 }
 0x285   : > { %1493 = vmatpush3.bf16.msra.mxu0 %v1633_v5 }
 0x286   : > { %1494 = vmatprep.subr.bf16.mxu0 %v1767_v47 }
 0x289   : > { %1495 = vmatpush3.bf16.msra.mxu0 %v1634_v6 }
 0x28a   : > { %1496 = vmatprep.subr.bf16.mxu0 %v1767_v47 }
 0x28d   : > { %1497 = vmatpush3.bf16.msra.mxu0 %v1635_v23 }
 0x28e   : > { %1498 = vmatprep.subr.bf16.mxu0 %v1767_v47  ;;  %v1640_v47 = vld [vmem:[#allocation3 + $0x170] ss:$8 sps:$4 sm:$0xff]  }
 0x2c7   : > { %v2055_v24 = vpop.f32.mrb[4].mxu1 }
 0x2c8   : > { %v2057_v25 = vpop.f32.mrb[5].mxu1 }
 0x2c9   : > { %v779_v26 = vpop.f32.mrb[6].mxu1 }
 0x2ca   : > { %v780_v27 = vpop.f32.mrb[7].mxu1 }
 0x2cb   : > { %v1636_v27 = vld [vmem:[#allocation3 + $0x150] ss:$8 sps:$4 sm:$0x3f]  }
 0x353   : > { %v691_v37 = vpop.f32.mrb[2].mxu0 }
 0x354   : > { %v2072_v38 = vadd.f32 %v691_v37, %v303_v36  ;;  %v693_v40 = vpop.f32.mrb[3].mxu0  ;;  %v1642_v37 = vld [vmem:[#allocation3 + $0x174] ss:$8 sps:$4 sm:$0xff]  }
 0x355   : > { %v1645_v40 = vld [vmem:[#allocation3 + $0x184] ss:$8 sps:$4 sm:$0xff]  }
 0x356   : > { %v696_v41 = vmul.f32 0.5, %v2072_v38  ;;  %1284 = vst.msk [vmem:[%s2062_s15 + $0x2] sm:$0x1] %vm1283_vm9, %v2072_v38 }
 0x358   : > { %v697_v42 = vmul.f32 1.442695, %v696_v41  ;;  %v1643_v41 = vld [vmem:[#allocation3 + $0x180] ss:$8 sps:$4 sm:$0xff]  }
 0x35a   : > { %1652 = vpow2.f32 %v697_v42  ;;  %v1648_v42 = vld [vmem:[#allocation3 + $0x194] ss:$8 sps:$4 sm:$0xff]  }
 0x364   : > { %v1653_v43 = vpop.eup %1652 }
 0x365   : > { %v706_v44 = vrot.slane %v1653_v43, %v1962_v39  ;;  %v1646_v43 = vld [vmem:[#allocation3 + $0x190] ss:$8 sps:$4 sm:$0xff]  }
 0x367   : > { %v713_v45 = vrot.slane %v706_v44, %v1962_v39  ;;  %v1620_v39 = vld [vmem:[#allocation3 + $0x40] ss:$8 sps:$4 sm:$0xff]   ;;  %v1651_v44 = vld [vmem:[#allocation3 + $0x1a4] ss:$8 sps:$4 sm:$0x3f]  }
 0x369   : > { %714 = vrot.lane.b32.xlu1 %v713_v45, %s1776_s16  ;;  %v1649_v45 = vld [vmem:[#allocation3 + $0x1a0] ss:$8 sps:$4 sm:$0x3f]  }
 0x3db   : > { %v715_v48 = vpop.permute.xlu1 %714 }
 0x3dc   : > { %v717_v49 = vmul.f32 %v715_v48, %v695_v46 }
 0x3de   : > { %v718_v50 = vadd.f32 %v717_v49, %v2072_v38 }
 0x3e0   : > { %v720_v52 = vpack.c.bf16 %v718_v50, %v718_v50 }
 0x3e2   : > { %1422 = vmatmul.mubr.msk.bf16.vlgmr.msra.gmra.mrb[8].mxu1 %vm314_vm4, %v720_v52  ;;  %vm1069_vm4 = vcmask 1045504  }
 0x3e3   : > { %985 = vmatpush1.bf16.msra.mxu1 %v1618_v51  ;;  %v1071_v26 = vsel %vm1069_vm4, %v2066_v32, 0 }
 0x3e4   : > { %986 = vmatprep.subr.bf16.mxu1 %v1764_v10  ;;  %v1193_v46 = vand.u32 %v1651_v44, %v1071_v26  ;;  %v1190_v48 = vand.u32 %v1649_v45, %v1071_v26 }
 0x3e7   : > { %987 = vmatpush1.bf16.msra.mxu1 %v1619_v53 }
 0x3e8   : > { %988 = vmatprep.subr.bf16.mxu1 %v1764_v10 }
 0x3eb   : > { %989 = vmatpush1.bf16.msra.mxu1 %v1620_v39 }
 0x3ec   : > { %990 = vmatprep.subr.bf16.mxu1 %v1764_v10 }
 0x3ef   : > { %991 = vmatpush1.bf16.msra.mxu1 %v1621_v54 }
 0x3f0   : > { %992 = vmatprep.subr.bf16.mxu1 %v1764_v10 }
 0x3f3   : > { %993 = vmatpush1.bf16.msra.mxu1 %v1622_v55  ;;  %v1408_v55 = vld [vmem:[%s2193_s4 + $0x17] ss:$8 sm:$0x3] }
 0x3f4   : > { %994 = vmatprep.subr.bf16.mxu1 %v1764_v10 }
 0x3f7   : > { %995 = vmatpush1.bf16.msra.mxu1 %v1623_v56  ;;  %v1179_v56 = vrot.slane %v1408_v55, %v2050_v20 }
 0x3f8   : > { %996 = vmatprep.subr.bf16.mxu1 %v1764_v10 }
 0x3fb   : > { %997 = vmatpush1.bf16.msra.mxu1 %v1624_v57  ;;  %v1183_v57 = vrot.slane %v1408_v55, %v2047_v19 }
 0x3fc   : > { %998 = vmatprep.subr.bf16.mxu1 %v1764_v10 }
 0x3ff   : > { %999 = vmatpush1.bf16.msra.mxu1 %v1625_v58 }
 0x400   : > { %1000 = vmatprep.subr.bf16.mxu1 %v1764_v10 }
 0x403   : > { %1001 = vmatpush1.bf16.msra.mxu1 %v1626_v59 }
 0x404   : > { %1002 = vmatprep.subr.bf16.mxu1 %v1764_v10 }
 0x407   : > { %1003 = vmatpush1.bf16.msra.mxu1 %v1627_v60 }
 0x408   : > { %1004 = vmatprep.subr.bf16.mxu1 %v1764_v10 }
 0x40b   : > { %1005 = vmatpush1.bf16.msra.mxu1 %v1628_v61 }
 0x40c   : > { %1006 = vmatprep.subr.bf16.mxu1 %v1764_v10 }
 0x40f   : > { %1007 = vmatpush1.bf16.msra.mxu1 %v1629_v62 }
 0x410   : > { %1008 = vmatprep.subr.bf16.mxu1 %v1764_v10 }
 0x413   : > { %1009 = vmatpush1.bf16.msra.mxu1 %v1630_v63 }
 0x414   : > { %1010 = vmatprep.subr.bf16.mxu1 %v1764_v10 }
 0x417   : > { %1011 = vmatpush1.bf16.msra.mxu1 %v1631_v2 }
 0x418   : > { %1012 = vmatprep.subr.bf16.mxu1 %v1764_v10 }
 0x41b   : > { %1013 = vmatpush1.bf16.msra.mxu1 %v982_v3 }
 0x4b5   : > { %v837_v9 = vpop.f32.mrb[8].mxu1 }
 0x4b6   : > { %v838_v12 = vadd.f32 %v837_v9, %v2055_v24  ;;  %v839_v13 = vpop.f32.mrb[9].mxu1  ;;  %v1073_v24 = vand.u32 %v1636_v27, %v1071_v26 }
 0x4b7   : > { %v840_v14 = vadd.f32 %v839_v13, %v2057_v25  ;;  %v841_v15 = vpop.f32.mrb[10].mxu1  ;;  %v1639_v25 = vld [vmem:[#allocation3 + $0x164] ss:$8 sps:$4 sm:$0xff]  }
 0x4b8   : > { %v855_v16 = vadd.f32 %v848_v8, %v838_v12  ;;  %v842_v17 = vpop.f32.mrb[11].mxu1  ;;  %1499 = vmatpush3.bf16.msra.mxu0 %v1073_v24 }
 0x4b9   : > { %v856_v18 = vadd.f32 %v852_v11, %v840_v14  ;;  %1195 = vmatprep.subr.bf16.mxu0 %v1639_v25 }
 0x4ba   : > { %v857_v22 = vpack.c.bf16 %v855_v16, %v855_v16 }
 0x4bb   : > { %v858_v21 = vpack.c.bf16 %v856_v18, %v856_v18 }
 0x4bd   : > { %1438 = vmatprep.mubr.msk.bf16.mxu1 %vm975_vm0, %v858_v21 }
 0x4be   : > { %1017 = vmatmul.mubr.bf16.vlgmr.msra.gmra.mrb[12].mxu1 %v857_v22 }
 0x591   : > { %v1018_v29 = vpop.f32.mrb[12].mxu1 }
 0x592   : > { %v1019_v30 = vadd.f32 %v1018_v29, %v306_v28  ;;  %v1020_v31 = vpop.f32.mrb[13].mxu1 }
 0x593   : > { %v1021_v33 = vpop.f32.mrb[14].mxu1 }
 0x594   : > { %v1024_v32 = vmax.f32 %v1019_v30, 0.0  ;;  %v1022_v34 = vpop.f32.mrb[15].mxu1 }
 0x596   : > { %v1025_v36 = vpack.c.bf16 %v1024_v32, %v1024_v32 }
 0x598   : > { %1501 = vmatmul.mubr.msk.bf16.vlgmr.msra.gmra.mrb[4].mxu0 %vm1065_vm7, %v1025_v36 }
 0x599   : > { %1196 = vmatpush1.bf16.msra.mxu0 %v1637_v35  ;;  %1227 = vmatprep.mubr.bf16.mxu0 %v1764_v10  ;;  %v307_v10 = vld [vmem:[%s2193_s4 + $0x16] ss:$0 sm:$0xff] }
 0x59a   : > { %1197 = vmatprep.subr.bf16.mxu0 %v1642_v37 }
 0x59d   : > { %1198 = vmatpush1.bf16.msra.mxu0 %v1640_v47 }
 0x59e   : > { %1199 = vmatprep.subr.bf16.mxu0 %v1645_v40 }
 0x5a1   : > { %1200 = vmatpush1.bf16.msra.mxu0 %v1643_v41 }
 0x5a2   : > { %1201 = vmatprep.subr.bf16.mxu0 %v1648_v42 }
 0x5a5   : > { %1202 = vmatpush1.bf16.msra.mxu0 %v1646_v43 }
 0x5a6   : > { %1203 = vmatprep.subr.bf16.mxu0 %v1193_v46 }
 0x5a9   : > { %1204 = vmatpush1.bf16.msra.mxu0 %v1190_v48 }
 0x66b   : > { %v1109_v49 = vpop.f32.mrb[4].mxu0 }
 0x66c   : > { %v1110_v50 = vadd.f32 %v1109_v49, %v307_v10  ;;  %v1502_v51 = vpop.f32.mrb[5].mxu0 }
 0x66d   : > { %v1112_v52 = vpop.f32.mrb[6].mxu0 }
 0x66e   : > { %v1115_v53 = vmax.f32 %v1110_v50, 0.0  ;;  %v1503_v39 = vpop.f32.mrb[7].mxu0 }
 0x670   : > { %v1116_v54 = vpack.c.bf16 %v1115_v53, %v1115_v53 }
 0x672   : > { %1455 = vmatmul.mubr.msk.bf16.vlgmr.msra.gmra.mrb[8].mxu0 %vm1065_vm7, %v1116_v54 }
 0x745   : > { %v1229_v58 = vpop.f32.mrb[8].mxu0 }
 0x746   : > { %v1230_v59 = vadd.f32 %v1229_v58, %v1179_v56  ;;  %v1231_v60 = vpop.f32.mrb[9].mxu0 }
 0x747   : > { %v1232_v61 = vadd.f32 %v1231_v60, %v1183_v57  ;;  %v1233_v62 = vpop.f32.mrb[10].mxu0 }
 0x748   : > { %v1236_v63 = vsub.f32 0.0, %v1230_v59  ;;  %v1234_v0 = vpop.f32.mrb[11].mxu0  ;;  %v1243_v1 = vsel %vm1242_vm8, %v1230_v59, -inf }
 0x749   : > { %v1245_v2 = vsel %vm1244_vm10, %v1232_v61, -inf }
 0x74a   : > { %v1237_v3 = vmul.f32 1.442695, %v1236_v63  ;;  %v1246_v4 = vmax.f32 %v1243_v1, %v1245_v2 }
 0x74c   : > { %1654 = vpow2.f32 %v1237_v3  ;;  %1247 = vmax.xlane.f32.xlu0 %v1246_v4 }
 0x756   : > { %v1655_v5 = vpop.eup %1654 }
 0x757   : > { %v1239_v20 = vadd.f32 1.0, %v1655_v5 }
 0x759   : > { %1656 = vrcp.f32 %v1239_v20 }
 0x763   : > { %v1657_v19 = vpop.eup %1656 }
 0x764   : > { %1273 = vst.msk [vmem:[%s2062_s15] sm:$0x1] %vm1272_vm11, %v1657_v19 }
 0x7d9   : > { %v1248_v6 = vpop.xlane.xlu0 %1247 }
 0x7da   : > { %v1249_v7 = vsub.f32 %v1230_v59, %v1248_v6  ;;  %v1250_v8 = vsub.f32 %v1232_v61, %v1248_v6 }
 0x7dc   : > { %v1251_v9 = vmul.f32 1.442695, %v1249_v7  ;;  %v1253_v11 = vmul.f32 1.442695, %v1250_v8 }
 0x7de   : > { %1658 = vpow2.f32 %v1251_v9 }
 0x7df   : > { %1660 = vpow2.f32 %v1253_v11 }
 0x7e8   : > { %v1659_v12 = vpop.eup %1658 }
 0x7e9   : > { %1257 = vrot.lane.b32.xlu1 %v1659_v12, %s1778_s9  ;;  %v1661_v13 = vpop.eup %1660 }
 0x7ed   : > { %1259 = vrot.lane.b32.xlu1 %v1661_v13, %s1778_s9 }
 0x85b   : > { %v1258_v14 = vpop.permute.xlu1 %1257 }
 0x85f   : > { %v1260_v15 = vpop.permute.xlu1 %1259 }
 0x860   : > { %v1262_v16 = vsel %vm1261_vm12, %v1258_v14, %v1260_v15 }
 0x861   : > { %v1265_v17 = vsel %vm1264_vm13, %v1262_v16, 0.0 }
 0x862   : > { %1266 = vadd.xlane.f32.xlu1 %v1265_v17 }
 0x8ef   : > { %v1267_v18 = vpop.xlane.xlu1 %1266 }
 0x8f0   : > { %1662 = vrcp.f32 %v1267_v18 }
 0x8fa   : > { %v1663_v21 = vpop.eup %1662 }
 0x8fb   : > { %v1270_v22 = vmul.f32 %v1663_v21, %v1661_v13  ;;  %v1269_v23 = vmul.f32 %v1663_v21, %v1659_v12 }
 0x8fd   : > { %1278 = vrot.lane.b32.xlu1 %v1270_v22, %s1778_s9  ;;  %1276 = vrot.lane.b32.xlu0 %v1269_v23, %s1778_s9 }
 0x901   : > { %1286 = vrot.lane.b32.xlu0 %v2072_v38, %s1776_s16  ;;  %s1692_s16 = scalar_lea.vmem %s2145_s18, 64 }
 0x902   : > { %p1693_p6 = scmp.ne.s32.totalorder %s2145_s18, %s1692_s16  ;;  %p1700_p3 = scmp.lt.s32.totalorder %s1698_s29, %s1692_s16 }
 0x904   : > { %p1694_p10 = pnand %p1693_p6, %p2216_p9  ;;  %p1701_p4 = por %p1700_p3, %p1699_p2 }
 0x906   : > { %p1695_p12 = pneg %p1694_p10 }
 0x908   : > { %p1702_p7 = pnand %p1701_p4, %p1695_p12 }
 0x96f   : > { %v1279_v26 = vpop.permute.xlu1 %1278  ;;  %v1277_v27 = vpop.permute.xlu0 %1276 }
 0x970   : > { %v1280_v24 = vsel %vm1261_vm12, %v1277_v27, %v1279_v26 }
 0x971   : > { %1282 = vst.msk [vmem:[%s2062_s15 + $0x1] sm:$0x1] %vm1264_vm13, %v1280_v24 }
 0x973   : > { %v1287_v25 = vpop.permute.xlu0 %1286 }
 0x974   : > { %1289 = vst.msk [vmem:[%s2062_s15 + $0x3] sm:$0x1] %vm1283_vm9, %v1287_v25 }
 0x975   : > { %1705 = shalt.err (!%p1702_p7)
}
 0x976   : > { %s1706_s12 = scalar_lea.hbm %s2143_s20, 64  ;;  %s1710_s14 = scalar_lea.hbm %s2195_s6, 256 }
 0x977   : > { %p1707_p8 = scmp.ne.s32.totalorder %s2143_s20, %s1706_s12  ;;  %p1711_p1 = scmp.lt.u32.totalorder %s2143_s20, %s2195_s6 }
 0x978   : > { %p1712_p0 = scmp.lt.u32.totalorder %s1710_s14, %s1706_s12  ;;  %p1714_p6 = scmp.lt.u32.totalorder %s1706_s12, %s2143_s20 }
 0x979   : > { %p1708_p11 = pnand %p1707_p8, %p2216_p9 }
 0x97a   : > { %p1713_p5 = por %p1712_p0, %p1711_p1 }
 0x97b   : > { %p1709_p13 = pneg %p1708_p11 }
 0x97c   : > { %p1715_p10 = por %p1714_p6, %p1713_p5 }
 0x97e   : > { %p1716_p12 = pnand %p1715_p10, %p1709_p13 }
 0x980   : > { %1719 = shalt.err (!%p1716_p12)
}
 0x981   : > { %1547 = dma.vmem_to_hbm [thread:$0]  (%p2216_p9), %s2145_s18, 64, %s2143_s20, %s1291_s25  }
 0x982 PF: > { %p1559_p2 = scmp.ge.s32.totalorder %s1758_s24, 2  ;;  %s1316_s17 = sand.u32 1, %s1746_s21  }
 0x983   : > { %p2217_p3 = scmp.ne.s32.totalorder %s2200_s8, 0  ;;  %s1317_s19 = scalar_lea.sflag [#allocation5], %s1316_s17 }
 0x985   : > { %p1554_p4 = pnand %p1559_p2, %p2217_p3 }
 0x987   : > { %1741 = dma.done.wait (!%p1554_p4), %s1317_s19, 64  }
 0x988   : > { %1743 = vsyncadd (!%p1554_p4), %s1317_s19, 4294967232  ;;  %p17_p7 = scmp.ge.s32.totalorder %s1840_s27, 6   ;;  %s2218_s21 = smov %s1750_s22 }
 0x989   : > { %s2219_s22 = smov %s1754_s23  ;;  %s2220_s23 = smov %s1851_s30 }
 0x98a   : > { %s2221_s24 = smov %s1840_s27  ;;  %19 = sbr.rel (!%p17_p7) target bundleno = 4 (0x4), region = 92 }
 0x991   :  { %1322 = vsyncpa [#allocation4], 1 }
 0x992   :  { %1324 = vsyncpa [#allocation4 + $0x1], 1 }
 0x993   :  { %1325 = vsyncpa [#allocation5], 1 }
 0x994   :  { %1327 = vsyncpa [#allocation5 + $0x1], 1 }

</bundles_post_ra>
